<compile_context>
chip_gen: v5e
topology: v5e:2x2
jax: 0.10.0
libtpu: 0.0.40
codegen_flags: <defaults>
</compile_context>

<pallas_src>
import functools

import numpy as np
import jax
import jax.numpy as jnp
from jax import lax
from jax.experimental import pallas as pl
from jax.experimental.pallas import tpu as pltpu

_LANE = 128
_SUBLANE = 8


def _cdiv(a, b):
    return -(-a // b)


def _round_up(x, m):
    return ((x + m - 1) // m) * m


def _vmem_capacity_bytes():
    try:
        cap = int(pltpu.get_tpu_info().vmem_capacity_bytes)
    except Exception:
        cap = 64 * 1024 * 1024  # conservative (v7x per-TC)
    return max(16 * 1024 * 1024, min(cap, 128 * 1024 * 1024))


def _pool_indicator(in_size: int, out_size: int):
    """0/1 indicator matrix (out, in) + f32 1/count vector, PyTorch window rule
    start = floor(i*In/Out), end = ceil((i+1)*In/Out)."""
    ind = np.zeros((out_size, in_size), dtype=np.float32)
    scale = np.zeros((out_size,), dtype=np.float32)
    for i in range(out_size):
        s = (i * in_size) // out_size
        e = -((-(i + 1) * in_size) // out_size)
        ind[i, s:e] = 1.0
        scale[i] = 1.0 / float(e - s)
    return ind, scale


# ---------------------------------------------------------------------------
# Kernel: one K-tile of   acc += A @ x^T   (or x @ A^T),  finalize = acc*scale
# ---------------------------------------------------------------------------

def _pool_kernel(a_ref, x_ref, s_ref, o_ref, acc_ref, *, batch_on_lanes, precision):
    k = pl.program_id(1)

    @pl.when(k == 0)
    def _init():
        acc_ref[...] = jnp.zeros_like(acc_ref)

    if batch_on_lanes:
        # (M, tk) x (tb, tk)^T -> (M, tb): fused batch on lanes
        part = lax.dot_general(
            a_ref[...], x_ref[...],
            dimension_numbers=(((1,), (1,)), ((), ())),
            preferred_element_type=jnp.float32,
            precision=precision)
    else:
        # (tb, tk) x (M, tk)^T -> (tb, M): output features on lanes
        part = lax.dot_general(
            x_ref[...], a_ref[...],
            dimension_numbers=(((1,), (1,)), ((), ())),
            preferred_element_type=jnp.float32,
            precision=precision)
    acc_ref[...] += part

    @pl.when(k == pl.num_programs(1) - 1)
    def _finalize():
        o_ref[...] = (acc_ref[...] * s_ref[...]).astype(o_ref.dtype)


# ---------------------------------------------------------------------------
# Generic pooled matmul along the last dim of a 2-D array
# ---------------------------------------------------------------------------

def _pool_lastdim(x2d, ind_np, scale_np, out_dtype):
    """x2d: (B, K); ind_np: (M, K) 0/1 indicator; scale_np: (M,) f32 1/count.
    Returns (B, M) = (x2d @ ind^T) * scale via a tiled Pallas kernel."""
    b, k_in = int(x2d.shape[0]), int(x2d.shape[1])
    m = int(ind_np.shape[0])
    cd = x2d.dtype
    itemsize = int(np.dtype(cd).itemsize)
    precision = lax.Precision.HIGHEST if cd == jnp.float32 else None

    vmem_cap = _vmem_capacity_bytes()
    budget = 3 * vmem_cap // 8           # ~48 MiB on 128 MiB parts, ~24 MiB on v7x

    batch_on_lanes = m < _LANE
    sub_m = _round_up(m, _SUBLANE)
    m_lanes = _round_up(m, _LANE)

    # ---- contraction (K) tiling ------------------------------------------
    a_full_bytes = sub_m * _round_up(k_in, _LANE) * itemsize
    if a_full_bytes <= budget // 3:
        tk, grid_k, k_pad = k_in, 1, k_in
        a_bytes = a_full_bytes                          # Buffered(1): one copy
    else:
        per_lane = 2 * sub_m * itemsize                 # double-buffered A column
        tk = max(_LANE, ((budget // 3) // per_lane) // _LANE * _LANE)
        grid_k = _cdiv(k_in, tk)
        k_pad = grid_k * tk
        a_bytes = 2 * sub_m * tk * itemsize

    # ---- batch tiling ------------------------------------------------------
    x_row = 2 * _round_up(tk, _LANE) * itemsize         # double-buffered x row
    if batch_on_lanes:
        acc_row = sub_m * 4
        out_row = 2 * sub_m * itemsize
    else:
        acc_row = m_lanes * 4
        out_row = 2 * m_lanes * itemsize
    per_row = x_row + acc_row + out_row
    cap_rows = max(_SUBLANE, (budget - a_bytes) // per_row)

    lane_tiles_ok = (not batch_on_lanes) or (
        (_round_up(b, _LANE) - b) <= max(b // 8, 0) and cap_rows >= _LANE)

    if batch_on_lanes and not lane_tiles_ok:
        # small / awkward fused batch: single sublane-aligned tile (masked
        # stores on a tiny output are cheaper than 128-padding the input DMA)
        tb = max(_SUBLANE, _round_up(b, _SUBLANE))
        grid_b, b_pad = 1, tb
        if a_bytes + tb * per_row > budget and grid_k == 1 and k_in > _LANE:
            # re-balance: tile K so the fixed batch tile still fits VMEM
            denom = 2 * (sub_m * itemsize + tb * itemsize)
            avail = max(denom * _LANE, budget - tb * (acc_row + out_row))
            tk = max(_LANE, (avail // denom) // _LANE * _LANE)
            grid_k = _cdiv(k_in, tk)
            k_pad = grid_k * tk
            a_bytes = 2 * sub_m * tk * itemsize
            x_row = 2 * _round_up(tk, _LANE) * itemsize
            per_row = x_row + acc_row + out_row
    else:
        g = _LANE if batch_on_lanes else _SUBLANE
        tb_cap = max(g, (cap_rows // g) * g)
        tb_target = _round_up(_cdiv(b, 4), g)           # >= 4 steps (2 per TC on v7x)
        tb_max = max(g, min(tb_cap, tb_target))
        steps = _cdiv(b, tb_max)
        tb = _round_up(_cdiv(b, steps), g)
        grid_b = _cdiv(b, tb)
        b_pad = grid_b * tb

    # ---- pad operands ------------------------------------------------------
    a_np = np.zeros((m, k_pad), dtype=np.float32)
    a_np[:, :k_in] = ind_np
    a_dev = jnp.asarray(a_np, dtype=cd)                 # 0/1 -> exact in bf16/f16

    if b_pad != b or k_pad != k_in:
        x2d = jnp.pad(x2d, ((0, b_pad - b), (0, k_pad - k_in)))

    if batch_on_lanes:
        scale2d = scale_np.reshape(m, 1)
        out_shape = jax.ShapeDtypeStruct((m, b_pad), out_dtype)
        out_block = (m, tb)
        out_imap = lambda i, k: (0, i)
        acc_shape = (m, tb)
    else:
        scale2d = scale_np.reshape(1, m)
        out_shape = jax.ShapeDtypeStruct((b_pad, m), out_dtype)
        out_block = (tb, m)
        out_imap = lambda i, k: (i, 0)
        acc_shape = (tb, m)
    s_dev = jnp.asarray(scale2d, dtype=jnp.float32)

    need = a_bytes + tb * per_row + 2 * sub_m * _LANE * 4 + (4 << 20)
    vmem_limit = int(min(vmem_cap, max(need, 32 << 20)))

    cost = pl.CostEstimate(
        flops=int(2 * b_pad * k_pad * m),
        transcendentals=0,
        bytes_accessed=int((b_pad * k_pad + b_pad * m + m * k_pad) * itemsize),
    )

    kernel = functools.partial(_pool_kernel,
                               batch_on_lanes=batch_on_lanes,
                               precision=precision)

    def _run(single_buffer):
        def const_spec(shape, imap):
            # constant index_map -> never re-fetched; single buffer saves VMEM
            if single_buffer:
                return pl.BlockSpec(shape, imap, pipeline_mode=pl.Buffered(1))
            return pl.BlockSpec(shape, imap)

        if grid_k == 1:
            a_spec = const_spec((m, tk), lambda i, k: (0, k))
        else:
            a_spec = pl.BlockSpec((m, tk), lambda i, k: (0, k))
        in_specs = [
            a_spec,                                              # pooling matrix
            pl.BlockSpec((tb, tk), lambda i, k: (i, k)),         # x tile
            const_spec(tuple(scale2d.shape), lambda i, k: (0, 0)),  # 1/count
        ]
        return pl.pallas_call(
            kernel,
            out_shape=out_shape,
            grid_spec=pltpu.PrefetchScalarGridSpec(
                num_scalar_prefetch=0,
                grid=(grid_b, grid_k),                           # reduction axis last
                in_specs=in_specs,
                out_specs=pl.BlockSpec(out_block, out_imap),
                scratch_shapes=[pltpu.VMEM(acc_shape, jnp.float32)],
            ),
            compiler_params=pltpu.CompilerParams(
                dimension_semantics=("parallel", "arbitrary"),
                vmem_limit_bytes=vmem_limit,
            ),
            cost_estimate=cost,
        )(a_dev, x2d, s_dev)

    try:
        out = _run(True)
    except Exception:
        out = _run(False)   # fallback: default double-buffering everywhere

    if batch_on_lanes:
        return out[:, :b].T        # tiny transpose: M < 128 rows
    return out[:b, :]


# ---------------------------------------------------------------------------
# Wrapper
# ---------------------------------------------------------------------------

def adaptive_avg_pool2d(x, output_size, _force_factorized=False):
    """x: (N, C, H, W) -> (N, C, OH, OW), matching F.adaptive_avg_pool2d."""
    if isinstance(output_size, int):
        output_size = (output_size, output_size)
    n, c, h, w = x.shape
    oh = h if output_size[0] is None else int(output_size[0])
    ow = w if output_size[1] is None else int(output_size[1])

    # MXU has no integer path (v7x) -> compute non-float inputs in f32.
    if not jnp.issubdtype(x.dtype, jnp.floating):
        x = x.astype(jnp.float32)
    elif x.dtype == jnp.float64:
        x = x.astype(jnp.float32)   # TODO(synk): f64 inputs are computed in f32.
    out_dtype = x.dtype

    b, hw, ohw = n * c, h * w, oh * ow
    itemsize = int(np.dtype(x.dtype).itemsize)

    ah_ind, sh = _pool_indicator(h, oh)   # (OH, H), (OH,)
    aw_ind, sw = _pool_indicator(w, ow)   # (OW, W), (OW,)

    # kron (1 lane-dense matmul) vs factorized (2 matmuls + HBM relayouts):
    # conservative cross-generation roofline with ~180 flop/byte MXU:HBM ratio.
    flop_per_byte = 180.0
    kron_time = (2.0 * b * hw * ohw) / flop_per_byte
    base_bytes = float(b * (hw + ohw) * itemsize)
    fact_time = max((2.0 * b * (hw * ow + h * ow * oh)) / flop_per_byte,
                    base_bytes + 4.0 * b * h * ow * itemsize)
    use_kron = kron_time <= max(base_bytes, fact_time)
    # even a K-tiled kron A block must fit the VMEM budget
    budget = 3 * _vmem_capacity_bytes() // 8
    if 2 * _round_up(ohw, _SUBLANE) * _LANE * itemsize > budget // 2:
        use_kron = False
    if _force_factorized:
        use_kron = False

    if use_kron:
        a_ind = np.kron(ah_ind, aw_ind)    # (OH*OW, H*W) 0/1 indicator
        scale = np.kron(sh, sw)            # (OH*OW,) = 1/window_size
        y = _pool_lastdim(x.reshape(b, hw), a_ind, scale, out_dtype)   # (B, OHW)
        return y.reshape(n, c, oh, ow)

    # factorized fallback: pool W, relayout, pool H (same kernel twice)
    t = _pool_lastdim(x.reshape(b * h, w), aw_ind, sw, out_dtype)      # (B*H, OW)
    t = jnp.transpose(t.reshape(b, h, ow), (0, 2, 1)).reshape(b * ow, h)
    y = _pool_lastdim(t, ah_ind, sh, out_dtype)                        # (B*OW, OH)
    y = jnp.transpose(y.reshape(b, ow, oh), (0, 2, 1))
    return y.reshape(n, c, oh, ow)


# ---------------------------------------------------------------------------
# Reference + test
# ---------------------------------------------------------------------------

def _reference_adaptive_avg_pool2d(x, output_size):
    if isinstance(output_size, int):
        output_size = (output_size, output_size)
    oh, ow = output_size
    n, c, h, w = x.shape
    out = np.zeros((n, c, oh, ow), dtype=np.float32)
    xnp = np.asarray(x, dtype=np.float32)
    for i in range(oh):
        hs, he = (i * h) // oh, -((-(i + 1) * h) // oh)
        for j in range(ow):
            ws, we = (j * w) // ow, -((-(j + 1) * w) // ow)
            out[:, :, i, j] = xnp[:, :, hs:he, ws:we].mean(axis=(2, 3))
    return out


if __name__ == "__main__":
    key = jax.random.PRNGKey(0)
    x = jax.random.normal(key, (2, 4, 16, 16), dtype=jnp.float32)
    x_np = np.asarray(x)

    # main case: non-divisible adaptive windows, OH*OW < 128 (batch on lanes)
    y = jax.block_until_ready(adaptive_avg_pool2d(x, (5, 3)))
    assert y.shape == (2, 4, 5, 3), y.shape
    np.testing.assert_allclose(np.asarray(y),
                               _reference_adaptive_avg_pool2d(x_np, (5, 3)),
                               rtol=1e-5, atol=1e-5)

    # OH*OW >= 128 path: output features on lanes, no wrapper transpose
    y2 = jax.block_until_ready(adaptive_avg_pool2d(x, (12, 12)))
    np.testing.assert_allclose(np.asarray(y2),
                               _reference_adaptive_avg_pool2d(x_np, (12, 12)),
                               rtol=1e-5, atol=1e-5)

    # factorized (two-pass) fallback path
    y3 = jax.block_until_ready(adaptive_avg_pool2d(x, (7, 5), _force_factorized=True))
    np.testing.assert_allclose(np.asarray(y3),
                               _reference_adaptive_avg_pool2d(x_np, (7, 5)),
                               rtol=1e-5, atol=1e-5)

    print("KERNEL_OK")
</pallas_src>

<mosaic_0001>
module attributes {stable_mosaic.version = 11 : i64} {
  func.func @_pool_kernel(%arg0: i32, %arg1: i32, %arg2: memref<15x256xf32, #tpu.memory_space<vmem>>, %arg3: memref<8x256xf32, #tpu.memory_space<vmem>>, %arg4: memref<15x1xf32, #tpu.memory_space<vmem>>, %arg5: memref<15x8xf32, #tpu.memory_space<vmem>>, %arg6: memref<15x8xf32, #tpu.memory_space<vmem>>) attributes {dimension_semantics = [#tpu.dimension_semantics<parallel>, #tpu.dimension_semantics<arbitrary>], iteration_bounds = array<i64: 1, 1>, scalar_prefetch = 0 : i64, scratch_operands = 1 : i64, tpu.core_type = #tpu.core_type<tc>, window_params = [{pipeline_mode = #tpu.pipeline_mode<synchronous>, transform_indices = @transform_0, window_bounds = array<i64: 15, 256>}, {transform_indices = @transform_1, window_bounds = array<i64: 8, 256>}, {pipeline_mode = #tpu.pipeline_mode<synchronous>, transform_indices = @transform_2, window_bounds = array<i64: 15, 1>}, {transform_indices = @transform_3, window_bounds = array<i64: 15, 8>}]} {
    %c0_i32 = arith.constant 0 : i32
    %0 = arith.cmpi eq, %arg1, %c0_i32 : i32
    %1 = arith.extui %0 : i1 to i32
    %c0_i32_0 = arith.constant 0 : i32
    %2 = arith.cmpi ne, %1, %c0_i32_0 : i32
    scf.if %2 {
      %cst_10 = arith.constant 0.000000e+00 : f32
      %12 = vector.broadcast %cst_10 : f32 to vector<15x8xf32>
      %c0_11 = arith.constant 0 : index
      %c0_12 = arith.constant 0 : index
      %13 = vector.load %arg6[%c0_11, %c0_12] : memref<15x8xf32, #tpu.memory_space<vmem>>, vector<15x8xf32>
      tpu.vector_store %arg6[%c0_11, %c0_12], %12 {strides = array<i32>} : memref<15x8xf32, #tpu.memory_space<vmem>>, vector<15x8xf32>,
    } else {
    }
    %c0 = arith.constant 0 : index
    %c0_1 = arith.constant 0 : index
    %3 = vector.load %arg2[%c0, %c0_1] : memref<15x256xf32, #tpu.memory_space<vmem>>, vector<15x256xf32>
    %c0_2 = arith.constant 0 : index
    %c0_3 = arith.constant 0 : index
    %4 = vector.load %arg3[%c0_2, %c0_3] : memref<8x256xf32, #tpu.memory_space<vmem>>, vector<8x256xf32>
    %cst = arith.constant dense<0.000000e+00> : vector<15x8xf32>
    %5 = tpu.matmul %3, %4, %cst {dimension_numbers = #tpu.dot_dimension_numbers<[1], [1], [0], [0], [0, 0, 1, 0], [], []>, precision = #tpu.contract_precision<fp32>} : vector<15x256xf32>, vector<8x256xf32>, vector<15x8xf32> -> vector<15x8xf32>
    %c0_4 = arith.constant 0 : index
    %c0_5 = arith.constant 0 : index
    %6 = vector.load %arg6[%c0_4, %c0_5] : memref<15x8xf32, #tpu.memory_space<vmem>>, vector<15x8xf32>
    %7 = arith.addf %6, %5 : vector<15x8xf32>
    %c0_6 = arith.constant 0 : index
    %c0_7 = arith.constant 0 : index
    %8 = vector.load %arg6[%c0_6, %c0_7] : memref<15x8xf32, #tpu.memory_space<vmem>>, vector<15x8xf32>
    tpu.vector_store %arg6[%c0_6, %c0_7], %7 {strides = array<i32>} : memref<15x8xf32, #tpu.memory_space<vmem>>, vector<15x8xf32>,
    %c0_i32_8 = arith.constant 0 : i32
    %9 = arith.cmpi eq, %arg1, %c0_i32_8 : i32
    %10 = arith.extui %9 : i1 to i32
    %c0_i32_9 = arith.constant 0 : i32
    %11 = arith.cmpi ne, %10, %c0_i32_9 : i32
    scf.if %11 {
      %c0_10 = arith.constant 0 : index
      %c0_11 = arith.constant 0 : index
      %12 = vector.load %arg6[%c0_10, %c0_11] : memref<15x8xf32, #tpu.memory_space<vmem>>, vector<15x8xf32>
      %c0_12 = arith.constant 0 : index
      %c0_13 = arith.constant 0 : index
      %13 = vector.load %arg4[%c0_12, %c0_13] : memref<15x1xf32, #tpu.memory_space<vmem>>, vector<15x1xf32>
      %14 = vector.broadcast %13 : vector<15x1xf32> to vector<15x8xf32>
      %15 = arith.mulf %12, %14 : vector<15x8xf32>
      %c0_14 = arith.constant 0 : index
      %c0_15 = arith.constant 0 : index
      %16 = vector.load %arg5[%c0_14, %c0_15] : memref<15x8xf32, #tpu.memory_space<vmem>>, vector<15x8xf32>
      tpu.vector_store %arg5[%c0_14, %c0_15], %15 {strides = array<i32>} : memref<15x8xf32, #tpu.memory_space<vmem>>, vector<15x8xf32>,
    } else {
    }
    return
  }
  func.func @transform_0(%arg0: i32, %arg1: i32) -> (i32, i32) {
    %c0_i32 = arith.constant 0 : i32
    %c0_i32_0 = arith.constant 0 : i32
    return %c0_i32, %arg1 : i32, i32
  }
  func.func @transform_1(%arg0: i32, %arg1: i32) -> (i32, i32) {
    %c0_i32 = arith.constant 0 : i32
    return %arg0, %arg1 : i32, i32
  }
  func.func @transform_2(%arg0: i32, %arg1: i32) -> (i32, i32) {
    %c0_i32 = arith.constant 0 : i32
    %c0_i32_0 = arith.constant 0 : i32
    %c0_i32_1 = arith.constant 0 : i32
    return %c0_i32, %c0_i32_0 : i32, i32
  }
  func.func @transform_3(%arg0: i32, %arg1: i32) -> (i32, i32) {
    %c0_i32 = arith.constant 0 : i32
    %c0_i32_0 = arith.constant 0 : i32
    return %c0_i32, %arg0 : i32, i32
  }
}

module attributes {stable_mosaic.version = 11 : i64} {
  func.func @_pool_kernel(%arg0: i32, %arg1: i32, %arg2: memref<15x256xf32, #tpu.memory_space<vmem>>, %arg3: memref<8x256xf32, #tpu.memory_space<vmem>>, %arg4: memref<15x1xf32, #tpu.memory_space<vmem>>, %arg5: memref<15x8xf32, #tpu.memory_space<vmem>>, %arg6: memref<15x8xf32, #tpu.memory_space<vmem>>) attributes {dimension_semantics = [#tpu.dimension_semantics<parallel>, #tpu.dimension_semantics<arbitrary>], iteration_bounds = array<i64: 1, 1>, scalar_prefetch = 0 : i64, scratch_operands = 1 : i64, tpu.core_type = #tpu.core_type<tc>, window_params = [{transform_indices = @transform_0, window_bounds = array<i64: 15, 256>}, {transform_indices = @transform_1, window_bounds = array<i64: 8, 256>}, {pipeline_mode = #tpu.pipeline_mode<synchronous>, transform_indices = @transform_2, window_bounds = array<i64: 15, 1>}, {transform_indices = @transform_3, window_bounds = array<i64: 15, 8>}]} {
    %c0_i32 = arith.constant 0 : i32
    %0 = arith.cmpi eq, %arg1, %c0_i32 : i32
    %1 = arith.extui %0 : i1 to i32
    %c0_i32_0 = arith.constant 0 : i32
    %2 = arith.cmpi ne, %1, %c0_i32_0 : i32
    scf.if %2 {
      %cst_10 = arith.constant 0.000000e+00 : f32
      %12 = vector.broadcast %cst_10 : f32 to vector<15x8xf32>
      %c0_11 = arith.constant 0 : index
      %c0_12 = arith.constant 0 : index
      %13 = vector.load %arg6[%c0_11, %c0_12] : memref<15x8xf32, #tpu.memory_space<vmem>>, vector<15x8xf32>
      tpu.vector_store %arg6[%c0_11, %c0_12], %12 {strides = array<i32>} : memref<15x8xf32, #tpu.memory_space<vmem>>, vector<15x8xf32>,
    } else {
    }
    %c0 = arith.constant 0 : index
    %c0_1 = arith.constant 0 : index
    %3 = vector.load %arg2[%c0, %c0_1] : memref<15x256xf32, #tpu.memory_space<vmem>>, vector<15x256xf32>
    %c0_2 = arith.constant 0 : index
    %c0_3 = arith.constant 0 : index
    %4 = vector.load %arg3[%c0_2, %c0_3] : memref<8x256xf32, #tpu.memory_space<vmem>>, vector<8x256xf32>
    %cst = arith.constant dense<0.000000e+00> : vector<15x8xf32>
    %5 = tpu.matmul %3, %4, %cst {dimension_numbers = #tpu.dot_dimension_numbers<[1], [1], [0], [0], [0, 0, 1, 0], [], []>, precision = #tpu.contract_precision<fp32>} : vector<15x256xf32>, vector<8x256xf32>, vector<15x8xf32> -> vector<15x8xf32>
    %c0_4 = arith.constant 0 : index
    %c0_5 = arith.constant 0 : index
    %6 = vector.load %arg6[%c0_4, %c0_5] : memref<15x8xf32, #tpu.memory_space<vmem>>, vector<15x8xf32>
    %7 = arith.addf %6, %5 : vector<15x8xf32>
    %c0_6 = arith.constant 0 : index
    %c0_7 = arith.constant 0 : index
    %8 = vector.load %arg6[%c0_6, %c0_7] : memref<15x8xf32, #tpu.memory_space<vmem>>, vector<15x8xf32>
    tpu.vector_store %arg6[%c0_6, %c0_7], %7 {strides = array<i32>} : memref<15x8xf32, #tpu.memory_space<vmem>>, vector<15x8xf32>,
    %c0_i32_8 = arith.constant 0 : i32
    %9 = arith.cmpi eq, %arg1, %c0_i32_8 : i32
    %10 = arith.extui %9 : i1 to i32
    %c0_i32_9 = arith.constant 0 : i32
    %11 = arith.cmpi ne, %10, %c0_i32_9 : i32
    scf.if %11 {
      %c0_10 = arith.constant 0 : index
      %c0_11 = arith.constant 0 : index
      %12 = vector.load %arg6[%c0_10, %c0_11] : memref<15x8xf32, #tpu.memory_space<vmem>>, vector<15x8xf32>
      %c0_12 = arith.constant 0 : index
      %c0_13 = arith.constant 0 : index
      %13 = vector.load %arg4[%c0_12, %c0_13] : memref<15x1xf32, #tpu.memory_space<vmem>>, vector<15x1xf32>
      %14 = vector.broadcast %13 : vector<15x1xf32> to vector<15x8xf32>
      %15 = arith.mulf %12, %14 : vector<15x8xf32>
      %c0_14 = arith.constant 0 : index
      %c0_15 = arith.constant 0 : index
      %16 = vector.load %arg5[%c0_14, %c0_15] : memref<15x8xf32, #tpu.memory_space<vmem>>, vector<15x8xf32>
      tpu.vector_store %arg5[%c0_14, %c0_15], %15 {strides = array<i32>} : memref<15x8xf32, #tpu.memory_space<vmem>>, vector<15x8xf32>,
    } else {
    }
    return
  }
  func.func @transform_0(%arg0: i32, %arg1: i32) -> (i32, i32) {
    %c0_i32 = arith.constant 0 : i32
    %c0_i32_0 = arith.constant 0 : i32
    return %c0_i32, %arg1 : i32, i32
  }
  func.func @transform_1(%arg0: i32, %arg1: i32) -> (i32, i32) {
    %c0_i32 = arith.constant 0 : i32
    return %arg0, %arg1 : i32, i32
  }
  func.func @transform_2(%arg0: i32, %arg1: i32) -> (i32, i32) {
    %c0_i32 = arith.constant 0 : i32
    %c0_i32_0 = arith.constant 0 : i32
    %c0_i32_1 = arith.constant 0 : i32
    return %c0_i32, %c0_i32_0 : i32, i32
  }
  func.func @transform_3(%arg0: i32, %arg1: i32) -> (i32, i32) {
    %c0_i32 = arith.constant 0 : i32
    %c0_i32_0 = arith.constant 0 : i32
    return %c0_i32, %arg0 : i32, i32
  }
}

</mosaic_0001>

<bundles_post_ra>
// kernel: tpu_custom_call.1
= control target key start
LH: loop header
LB: loop body
LE: loop exit
PB: predicated region body
PF: predicated region fallthrough
CT: control target
= control target key end

     0   :  { %8 = vsyncpa [#allocation4], 0  ;;  %s464_s15 = smov [#allocation3]   ;;  %s465_s17 = smov 256   ;;  %s516_s0 = inlined_call_operand.hbm [shape: f32[15,256], index: 0, kind: input, shape index: {}]   ;;  %s517_s1 = inlined_call_operand.vmem [shape: f32[8,256], index: 1, kind: input, shape index: {}]   ;;  %s518_s2 = inlined_call_operand.vmem [shape: f32[15,1], index: 2, kind: input, shape index: {}]   ;;  %s519_s3 = inlined_call_operand.vmem [shape: f32[15,8], index: 3, kind: output, shape index: {}]  }
   0x1   :  { %s13_s14 = sshll.u32 %s516_s0, 4  ;;  %s15_s16 = sshll.u32 %s464_s15, 4  ;;  %s14_s14 = int_to_ptr.hbm [resolvable:$true] %s13_s14  ;;  %s16_s16 = int_to_ptr.vmem [resolvable:$true] %s15_s16 }
   0x2   :  { %s466_s18 = smov 16  }
   0x3   :  { %21 = dma.hbm_to_vmem [thread:$0]  %s14_s14, 512, %s16_s16, [#allocation4], %s465_s17, %s465_s17, %s466_s18  }
   0x4   :  { %462 = dma.done.wait [#allocation4], 512  }
   0x5   :  { %463 = vsyncadd [#allocation4], 4294966784  ;;  %v42_v0 = vld [vmem:[%s517_s1] sm:$0xff]  ;;  %v38_v1 = vld [vmem:[#allocation3] sm:$0xff]  ;;  %v467_v35 = vmov 0   ;;  %vm34_vm0 = vcmask 64512  }
   0x6   :  { %v43_v2 = vld [vmem:[%s517_s1 + $0x8] sm:$0xff]  ;;  %v59_v3 = vand.u32 4294901760, %v42_v0  ;;  %v61_v4 = vand.u32 4294901760, %v38_v1  ;;  %v40_v6 = vld [vmem:[#allocation3 + $0x10] sm:$0x7f]  ;;  %v39_v7 = vld [vmem:[#allocation3 + $0x8] sm:$0xff]  ;;  %437 = vset.pattern.permute.xlu0 %v467_v35 }
   0x7   :  { %v236_v5 = vand.u32 4294901760, %v43_v2  ;;  %v69_v8 = vand.u32 4294901760, %v40_v6  ;;  %v238_v13 = vand.u32 4294901760, %v39_v7  ;;  %v41_v25 = vld [vmem:[#allocation3 + $0x18] sm:$0x7f]  ;;  %v411_v34 = vld [vmem:[%s518_s2] sm:$0xff] }
   0x8   :  { %v94_v9 = vsub.f32 %v42_v0, %v59_v3  ;;  %60 = vmatpush.xpose.msra.mxu0 %v59_v3  ;;  %153 = vmatpush.xpose.msra.mxu3 %v59_v3  ;;  %v62_v10 = vsub.f32 %v38_v1, %v61_v4  ;;  %v246_v28 = vand.u32 4294901760, %v41_v25  ;;  %v412_v38 = vld [vmem:[%s518_s2 + $0x8] sm:$0x7f]  ;;  %v468_v41 = vmov 0.0  }
   0x9   :  { %v271_v11 = vsub.f32 %v43_v2, %v236_v5  ;;  %v70_v12 = vsub.f32 %v40_v6, %v69_v8  ;;  %v239_v21 = vsub.f32 %v39_v7, %v238_v13  ;;  %415 = vperm.xlu0 %437, %v411_v34   ;;  %35 = vst.msk [vmem:[#allocation2] sm:$0xff] %vm34_vm0, %v468_v41  ;;  %vm36_vm1 = vcmask 63488  }
   0xa   :  { %125 = vmatpush.xpose.msra.mxu2 %v94_v9  ;;  %v63_v14 = vand.u32 4294901760, %v62_v10  ;;  %v95_v15 = vand.u32 4294901760, %v94_v9  ;;  %v247_v31 = vsub.f32 %v41_v25, %v246_v28  ;;  %37 = vst.msk [vmem:[#allocation2 + $0x8] sm:$0x7f] %vm36_vm1, %v468_v41 }
   0xb   :  { %v272_v16 = vand.u32 4294901760, %v271_v11  ;;  %v71_v20 = vand.u32 4294901760, %v70_v12  ;;  %v240_v27 = vand.u32 4294901760, %v239_v21 }
   0xc   :  { %v64_v17 = vsub.f32 %v62_v10, %v63_v14  ;;  %v96_v18 = vsub.f32 %v94_v9, %v95_v15  ;;  %157 = vmatmul.f32.vlgmr.msra.gmra.mxu3 %v63_v14  ;;  %185 = vmatpush.xpose.msrb.mxu0 %v95_v15  ;;  %v248_v33 = vand.u32 4294901760, %v247_v31 }
   0xd   :  { %v273_v19 = vsub.f32 %v271_v11, %v272_v16  ;;  %128 = vmatmul.f32.vlgmr.msra.gmra.mxu2 %v62_v10  ;;  %v72_v26 = vsub.f32 %v70_v12, %v71_v20  ;;  %v241_v30 = vsub.f32 %v239_v21, %v240_v27 }
   0xe   :  { %237 = vmatpush.xpose.msrb.mxu2 %v236_v5  ;;  %v65_v22 = vand.u32 4294901760, %v64_v17  ;;  %v97_v23 = vand.u32 4294901760, %v96_v18  ;;  %v249_v36 = vsub.f32 %v247_v31, %v248_v33 }
   0xf   :  { %v274_v24 = vand.u32 4294901760, %v273_v19  ;;  %v73_v29 = vand.u32 4294901760, %v72_v26  ;;  %v242_v32 = vand.u32 4294901760, %v241_v30 }
  0x10   :  { %66 = vmatmul.f32.vlgmr.msra.gmra.mxu0 %v65_v22  ;;  %98 = vmatpush.xpose.msra.mxu1 %v97_v23  ;;  %v250_v37 = vand.u32 4294901760, %v249_v36 }
  0x11   :  { %275 = vmatpush.xpose.msrb.mxu3 %v274_v24  ;;  %302 = vmatpush.xpose.msra.mxu0 %v271_v11  ;;  %v399_v23 = vld [vmem:[#allocation2 + $0x8] sm:$0x7f] }
  0x12   :  { %362 = vmatpush.xpose.msra.mxu2 %v272_v16  ;;  %420 = vperm.xlu0 %437, %v412_v38  }
  0x13   :  { %100 = vmatmul.f32.vlgmr.msra.gmra.mxu1 %v61_v4 }
  0x14   :  { %211 = vmatpush.xpose.msrb.mxu1 %v59_v3  ;;  %163 = vmatmul.f32.gmra.mxu3 %v71_v20 }
  0x15   :  { %388 = vmatpush.xpose.msra.mxu3 %v236_v5  ;;  %133 = vmatmul.f32.gmra.mxu2 %v70_v12 }
  0x18   :  { %330 = vmatpush.xpose.msra.mxu1 %v236_v5  ;;  %74 = vmatmul.f32.gmra.mxu0 %v73_v29 }
  0x1b   :  { %104 = vmatmul.f32.gmra.mxu1 %v69_v8 }
  0x1c   :  { %277 = vmatmul.f32.vlgmr.msrb.gmra.mxu3 %v238_v13 }
  0x1d   :  { %243 = vmatmul.f32.vlgmr.msrb.gmra.mxu2 %v242_v32 }
  0x20   :  { %187 = vmatmul.f32.vlgmr.msrb.gmra.mxu0 %v61_v4 }
  0x23   :  { %213 = vmatmul.f32.vlgmr.msrb.gmra.mxu1 %v61_v4 }
  0x24   :  { %281 = vmatmul.f32.gmra.mxu3 %v246_v28 }
  0x25   :  { %251 = vmatmul.f32.gmra.mxu2 %v250_v37 }
  0x28   :  { %191 = vmatmul.f32.gmra.mxu0 %v69_v8 }
  0x2b   :  { %217 = vmatmul.f32.gmra.mxu1 %v69_v8 }
  0x2c   :  { %390 = vmatmul.f32.vlgmr.msra.gmra.mxu3 %v238_v13 }
  0x2d   :  { %364 = vmatmul.f32.vlgmr.msra.gmra.mxu2 %v238_v13  ;;  %v398_v13 = vld [vmem:[#allocation2] sm:$0xff] }
  0x30   :  { %305 = vmatmul.f32.vlgmr.msra.gmra.mxu0 %v239_v21 }
  0x33   :  { %334 = vmatmul.f32.vlgmr.msra.gmra.mxu1 %v240_v27 }
  0x34   :  { %394 = vmatmul.f32.gmra.mxu3 %v246_v28 }
  0x35   :  { %368 = vmatmul.f32.gmra.mxu2 %v246_v28 }
  0x38   :  { %310 = vmatmul.f32.gmra.mxu0 %v247_v31 }
  0x3b   :  { %340 = vmatmul.f32.gmra.mxu1 %v248_v33 }
  0x7b   :  { %v416_v25 = vpop.permute.xlu0 %415 }
  0x84   :  { %v421_v29 = vpop.permute.xlu0 %420 }
  0x8d   :  { %v67_v39 = vpop.f32.mrf.mxu0 }
  0x8f   :  { %v158_v40 = vpop.f32.mrf.mxu3 }
  0x90   :  { %v101_v42 = vpop.f32.mrf.mxu1  ;;  %v129_v43 = vpop.f32.mrf.mxu2 }
  0x91   :  { %v102_v45 = vadd.f32 %v101_v42, %v67_v39 }
  0x93   :  { %v130_v49 = vadd.f32 %v129_v43, %v102_v45 }
  0x95   :  { %v75_v44 = vpop.f32.mrf.mxu0  ;;  %v159_v51 = vadd.f32 %v158_v40, %v130_v49 }
  0x97   :  { %v164_v46 = vpop.f32.mrf.mxu3 }
  0x98   :  { %v105_v47 = vpop.f32.mrf.mxu1  ;;  %v134_v48 = vpop.f32.mrf.mxu2 }
  0x99   :  { %v106_v52 = vadd.f32 %v105_v47, %v75_v44 }
  0x9b   :  { %v135_v57 = vadd.f32 %v134_v48, %v106_v52 }
  0x9d   :  { %v188_v50 = vpop.f32.mrf.mxu0  ;;  %v165_v60 = vadd.f32 %v164_v46, %v135_v57 }
  0x9e   :  { %v189_v54 = vadd.f32 %v188_v50, %v159_v51 }
  0x9f   :  { %v278_v53 = vpop.f32.mrf.mxu3 }
  0xa0   :  { %v214_v55 = vpop.f32.mrf.mxu1  ;;  %v244_v56 = vpop.f32.mrf.mxu2 }
  0xa1   :  { %v215_v58 = vadd.f32 %v214_v55, %v189_v54 }
  0xa3   :  { %v245_v62 = vadd.f32 %v244_v56, %v215_v58 }
  0xa5   :  { %v192_v59 = vpop.f32.mrf.mxu0  ;;  %v279_v2 = vadd.f32 %v278_v53, %v245_v62 }
  0xa6   :  { %v193_v63 = vadd.f32 %v192_v59, %v165_v60 }
  0xa7   :  { %v282_v61 = vpop.f32.mrf.mxu3 }
  0xa8   :  { %v218_v0 = vpop.f32.mrf.mxu1  ;;  %v252_v1 = vpop.f32.mrf.mxu2 }
  0xa9   :  { %v219_v3 = vadd.f32 %v218_v0, %v193_v63 }
  0xab   :  { %v253_v7 = vadd.f32 %v252_v1, %v219_v3 }
  0xad   :  { %v306_v4 = vpop.f32.mrf.mxu0  ;;  %v283_v12 = vadd.f32 %v282_v61, %v253_v7 }
  0xae   :  { %v307_v5 = vadd.f32 %v306_v4, %v279_v2 }
  0xaf   :  { %v391_v6 = vpop.f32.mrf.mxu3 }
  0xb0   :  { %v335_v8 = vpop.f32.mrf.mxu1  ;;  %v365_v9 = vpop.f32.mrf.mxu2 }
  0xb1   :  { %v336_v10 = vadd.f32 %v335_v8, %v307_v5 }
  0xb3   :  { %v366_v11 = vadd.f32 %v365_v9, %v336_v10 }
  0xb5   :  { %v392_v14 = vadd.f32 %v391_v6, %v366_v11  ;;  %v311_v15 = vpop.f32.mrf.mxu0 }
  0xb6   :  { %v312_v16 = vadd.f32 %v311_v15, %v283_v12 }
  0xb7   :  { %v400_v17 = vadd.f32 %v398_v13, %v392_v14  ;;  %v395_v21 = vpop.f32.mrf.mxu3 }
  0xb8   :  { %v341_v18 = vpop.f32.mrf.mxu1  ;;  %v369_v19 = vpop.f32.mrf.mxu2 }
  0xb9   :  { %403 = vst.msk [vmem:[#allocation2] sm:$0xff] %vm34_vm0, %v400_v17  ;;  %v342_v20 = vadd.f32 %v341_v18, %v312_v16 }
  0xbb   :  { %v370_v22 = vadd.f32 %v369_v19, %v342_v20 }
  0xbd   :  { %v396_v24 = vadd.f32 %v395_v21, %v370_v22 }
  0xbf   :  { %v401_v26 = vadd.f32 %v399_v23, %v396_v24 }
  0xc0   :  { %v409_v27 = vld [vmem:[#allocation2] sm:$0xff] }
  0xc1   :  { %v423_v28 = vmul.f32 %v416_v25, %v409_v27  ;;  %405 = vst.msk [vmem:[#allocation2 + $0x8] sm:$0x7f] %vm36_vm1, %v401_v26 }
  0xc3   :  { %425 = vst.msk [vmem:[%s519_s3] sm:$0xff] %vm34_vm0, %v423_v28 }
  0xc8   :  { %v410_v30 = vld [vmem:[#allocation2 + $0x8] sm:$0x7f] }
  0xc9   :  { %v424_v31 = vmul.f32 %v421_v29, %v410_v30 }
  0xcb   :  { %426 = vst.msk [vmem:[%s519_s3 + $0x8] sm:$0x7f] %vm36_vm1, %v424_v31 }
  0xcc   :  { %431 = vsyncpa [#allocation4], 1 }

// kernel: tpu_custom_call.1
= control target key start
LH: loop header
LB: loop body
LE: loop exit
PB: predicated region body
PF: predicated region fallthrough
CT: control target
= control target key end

     0   :  { %8 = vsyncpa [#allocation4], 0  ;;  %s464_s15 = smov [#allocation3]   ;;  %s465_s17 = smov 256   ;;  %s516_s0 = inlined_call_operand.hbm [shape: f32[15,256], index: 0, kind: input, shape index: {}]   ;;  %s517_s1 = inlined_call_operand.vmem [shape: f32[8,256], index: 1, kind: input, shape index: {}]   ;;  %s518_s2 = inlined_call_operand.vmem [shape: f32[15,1], index: 2, kind: input, shape index: {}]   ;;  %s519_s3 = inlined_call_operand.vmem [shape: f32[15,8], index: 3, kind: output, shape index: {}]  }
   0x1   :  { %s13_s14 = sshll.u32 %s516_s0, 4  ;;  %s15_s16 = sshll.u32 %s464_s15, 4  ;;  %s14_s14 = int_to_ptr.hbm [resolvable:$true] %s13_s14  ;;  %s16_s16 = int_to_ptr.vmem [resolvable:$true] %s15_s16 }
   0x2   :  { %s466_s18 = smov 16  }
   0x3   :  { %21 = dma.hbm_to_vmem [thread:$0]  %s14_s14, 512, %s16_s16, [#allocation4], %s465_s17, %s465_s17, %s466_s18  }
   0x4   :  { %462 = dma.done.wait [#allocation4], 512  }
   0x5   :  { %463 = vsyncadd [#allocation4], 4294966784  ;;  %v42_v0 = vld [vmem:[%s517_s1] sm:$0xff]  ;;  %v38_v1 = vld [vmem:[#allocation3] sm:$0xff]  ;;  %v467_v35 = vmov 0   ;;  %vm34_vm0 = vcmask 64512  }
   0x6   :  { %v43_v2 = vld [vmem:[%s517_s1 + $0x8] sm:$0xff]  ;;  %v59_v3 = vand.u32 4294901760, %v42_v0  ;;  %v61_v4 = vand.u32 4294901760, %v38_v1  ;;  %v40_v6 = vld [vmem:[#allocation3 + $0x10] sm:$0x7f]  ;;  %v39_v7 = vld [vmem:[#allocation3 + $0x8] sm:$0xff]  ;;  %437 = vset.pattern.permute.xlu0 %v467_v35 }
   0x7   :  { %v236_v5 = vand.u32 4294901760, %v43_v2  ;;  %v69_v8 = vand.u32 4294901760, %v40_v6  ;;  %v238_v13 = vand.u32 4294901760, %v39_v7  ;;  %v41_v25 = vld [vmem:[#allocation3 + $0x18] sm:$0x7f]  ;;  %v411_v34 = vld [vmem:[%s518_s2] sm:$0xff] }
   0x8   :  { %v94_v9 = vsub.f32 %v42_v0, %v59_v3  ;;  %60 = vmatpush.xpose.msra.mxu0 %v59_v3  ;;  %153 = vmatpush.xpose.msra.mxu3 %v59_v3  ;;  %v62_v10 = vsub.f32 %v38_v1, %v61_v4  ;;  %v246_v28 = vand.u32 4294901760, %v41_v25  ;;  %v412_v38 = vld [vmem:[%s518_s2 + $0x8] sm:$0x7f]  ;;  %v468_v41 = vmov 0.0  }
   0x9   :  { %v271_v11 = vsub.f32 %v43_v2, %v236_v5  ;;  %v70_v12 = vsub.f32 %v40_v6, %v69_v8  ;;  %v239_v21 = vsub.f32 %v39_v7, %v238_v13  ;;  %415 = vperm.xlu0 %437, %v411_v34   ;;  %35 = vst.msk [vmem:[#allocation2] sm:$0xff] %vm34_vm0, %v468_v41  ;;  %vm36_vm1 = vcmask 63488  }
   0xa   :  { %125 = vmatpush.xpose.msra.mxu2 %v94_v9  ;;  %v63_v14 = vand.u32 4294901760, %v62_v10  ;;  %v95_v15 = vand.u32 4294901760, %v94_v9  ;;  %v247_v31 = vsub.f32 %v41_v25, %v246_v28  ;;  %37 = vst.msk [vmem:[#allocation2 + $0x8] sm:$0x7f] %vm36_vm1, %v468_v41 }
   0xb   :  { %v272_v16 = vand.u32 4294901760, %v271_v11  ;;  %v71_v20 = vand.u32 4294901760, %v70_v12  ;;  %v240_v27 = vand.u32 4294901760, %v239_v21 }
   0xc   :  { %v64_v17 = vsub.f32 %v62_v10, %v63_v14  ;;  %v96_v18 = vsub.f32 %v94_v9, %v95_v15  ;;  %157 = vmatmul.f32.vlgmr.msra.gmra.mxu3 %v63_v14  ;;  %185 = vmatpush.xpose.msrb.mxu0 %v95_v15  ;;  %v248_v33 = vand.u32 4294901760, %v247_v31 }
   0xd   :  { %v273_v19 = vsub.f32 %v271_v11, %v272_v16  ;;  %128 = vmatmul.f32.vlgmr.msra.gmra.mxu2 %v62_v10  ;;  %v72_v26 = vsub.f32 %v70_v12, %v71_v20  ;;  %v241_v30 = vsub.f32 %v239_v21, %v240_v27 }
   0xe   :  { %237 = vmatpush.xpose.msrb.mxu2 %v236_v5  ;;  %v65_v22 = vand.u32 4294901760, %v64_v17  ;;  %v97_v23 = vand.u32 4294901760, %v96_v18  ;;  %v249_v36 = vsub.f32 %v247_v31, %v248_v33 }
   0xf   :  { %v274_v24 = vand.u32 4294901760, %v273_v19  ;;  %v73_v29 = vand.u32 4294901760, %v72_v26  ;;  %v242_v32 = vand.u32 4294901760, %v241_v30 }
  0x10   :  { %66 = vmatmul.f32.vlgmr.msra.gmra.mxu0 %v65_v22  ;;  %98 = vmatpush.xpose.msra.mxu1 %v97_v23  ;;  %v250_v37 = vand.u32 4294901760, %v249_v36 }
  0x11   :  { %275 = vmatpush.xpose.msrb.mxu3 %v274_v24  ;;  %302 = vmatpush.xpose.msra.mxu0 %v271_v11  ;;  %v399_v23 = vld [vmem:[#allocation2 + $0x8] sm:$0x7f] }
  0x12   :  { %362 = vmatpush.xpose.msra.mxu2 %v272_v16  ;;  %420 = vperm.xlu0 %437, %v412_v38  }
  0x13   :  { %100 = vmatmul.f32.vlgmr.msra.gmra.mxu1 %v61_v4 }
  0x14   :  { %211 = vmatpush.xpose.msrb.mxu1 %v59_v3  ;;  %163 = vmatmul.f32.gmra.mxu3 %v71_v20 }
  0x15   :  { %388 = vmatpush.xpose.msra.mxu3 %v236_v5  ;;  %133 = vmatmul.f32.gmra.mxu2 %v70_v12 }
  0x18   :  { %330 = vmatpush.xpose.msra.mxu1 %v236_v5  ;;  %74 = vmatmul.f32.gmra.mxu0 %v73_v29 }
  0x1b   :  { %104 = vmatmul.f32.gmra.mxu1 %v69_v8 }
  0x1c   :  { %277 = vmatmul.f32.vlgmr.msrb.gmra.mxu3 %v238_v13 }
  0x1d   :  { %243 = vmatmul.f32.vlgmr.msrb.gmra.mxu2 %v242_v32 }
  0x20   :  { %187 = vmatmul.f32.vlgmr.msrb.gmra.mxu0 %v61_v4 }
  0x23   :  { %213 = vmatmul.f32.vlgmr.msrb.gmra.mxu1 %v61_v4 }
  0x24   :  { %281 = vmatmul.f32.gmra.mxu3 %v246_v28 }
  0x25   :  { %251 = vmatmul.f32.gmra.mxu2 %v250_v37 }
  0x28   :  { %191 = vmatmul.f32.gmra.mxu0 %v69_v8 }
  0x2b   :  { %217 = vmatmul.f32.gmra.mxu1 %v69_v8 }
  0x2c   :  { %390 = vmatmul.f32.vlgmr.msra.gmra.mxu3 %v238_v13 }
  0x2d   :  { %364 = vmatmul.f32.vlgmr.msra.gmra.mxu2 %v238_v13  ;;  %v398_v13 = vld [vmem:[#allocation2] sm:$0xff] }
  0x30   :  { %305 = vmatmul.f32.vlgmr.msra.gmra.mxu0 %v239_v21 }
  0x33   :  { %334 = vmatmul.f32.vlgmr.msra.gmra.mxu1 %v240_v27 }
  0x34   :  { %394 = vmatmul.f32.gmra.mxu3 %v246_v28 }
  0x35   :  { %368 = vmatmul.f32.gmra.mxu2 %v246_v28 }
  0x38   :  { %310 = vmatmul.f32.gmra.mxu0 %v247_v31 }
  0x3b   :  { %340 = vmatmul.f32.gmra.mxu1 %v248_v33 }
  0x7b   :  { %v416_v25 = vpop.permute.xlu0 %415 }
  0x84   :  { %v421_v29 = vpop.permute.xlu0 %420 }
  0x8d   :  { %v67_v39 = vpop.f32.mrf.mxu0 }
  0x8f   :  { %v158_v40 = vpop.f32.mrf.mxu3 }
  0x90   :  { %v101_v42 = vpop.f32.mrf.mxu1  ;;  %v129_v43 = vpop.f32.mrf.mxu2 }
  0x91   :  { %v102_v45 = vadd.f32 %v101_v42, %v67_v39 }
  0x93   :  { %v130_v49 = vadd.f32 %v129_v43, %v102_v45 }
  0x95   :  { %v75_v44 = vpop.f32.mrf.mxu0  ;;  %v159_v51 = vadd.f32 %v158_v40, %v130_v49 }
  0x97   :  { %v164_v46 = vpop.f32.mrf.mxu3 }
  0x98   :  { %v105_v47 = vpop.f32.mrf.mxu1  ;;  %v134_v48 = vpop.f32.mrf.mxu2 }
  0x99   :  { %v106_v52 = vadd.f32 %v105_v47, %v75_v44 }
  0x9b   :  { %v135_v57 = vadd.f32 %v134_v48, %v106_v52 }
  0x9d   :  { %v188_v50 = vpop.f32.mrf.mxu0  ;;  %v165_v60 = vadd.f32 %v164_v46, %v135_v57 }
  0x9e   :  { %v189_v54 = vadd.f32 %v188_v50, %v159_v51 }
  0x9f   :  { %v278_v53 = vpop.f32.mrf.mxu3 }
  0xa0   :  { %v214_v55 = vpop.f32.mrf.mxu1  ;;  %v244_v56 = vpop.f32.mrf.mxu2 }
  0xa1   :  { %v215_v58 = vadd.f32 %v214_v55, %v189_v54 }
  0xa3   :  { %v245_v62 = vadd.f32 %v244_v56, %v215_v58 }
  0xa5   :  { %v192_v59 = vpop.f32.mrf.mxu0  ;;  %v279_v2 = vadd.f32 %v278_v53, %v245_v62 }
  0xa6   :  { %v193_v63 = vadd.f32 %v192_v59, %v165_v60 }
  0xa7   :  { %v282_v61 = vpop.f32.mrf.mxu3 }
  0xa8   :  { %v218_v0 = vpop.f32.mrf.mxu1  ;;  %v252_v1 = vpop.f32.mrf.mxu2 }
  0xa9   :  { %v219_v3 = vadd.f32 %v218_v0, %v193_v63 }
  0xab   :  { %v253_v7 = vadd.f32 %v252_v1, %v219_v3 }
  0xad   :  { %v306_v4 = vpop.f32.mrf.mxu0  ;;  %v283_v12 = vadd.f32 %v282_v61, %v253_v7 }
  0xae   :  { %v307_v5 = vadd.f32 %v306_v4, %v279_v2 }
  0xaf   :  { %v391_v6 = vpop.f32.mrf.mxu3 }
  0xb0   :  { %v335_v8 = vpop.f32.mrf.mxu1  ;;  %v365_v9 = vpop.f32.mrf.mxu2 }
  0xb1   :  { %v336_v10 = vadd.f32 %v335_v8, %v307_v5 }
  0xb3   :  { %v366_v11 = vadd.f32 %v365_v9, %v336_v10 }
  0xb5   :  { %v392_v14 = vadd.f32 %v391_v6, %v366_v11  ;;  %v311_v15 = vpop.f32.mrf.mxu0 }
  0xb6   :  { %v312_v16 = vadd.f32 %v311_v15, %v283_v12 }
  0xb7   :  { %v400_v17 = vadd.f32 %v398_v13, %v392_v14  ;;  %v395_v21 = vpop.f32.mrf.mxu3 }
  0xb8   :  { %v341_v18 = vpop.f32.mrf.mxu1  ;;  %v369_v19 = vpop.f32.mrf.mxu2 }
  0xb9   :  { %403 = vst.msk [vmem:[#allocation2] sm:$0xff] %vm34_vm0, %v400_v17  ;;  %v342_v20 = vadd.f32 %v341_v18, %v312_v16 }
  0xbb   :  { %v370_v22 = vadd.f32 %v369_v19, %v342_v20 }
  0xbd   :  { %v396_v24 = vadd.f32 %v395_v21, %v370_v22 }
  0xbf   :  { %v401_v26 = vadd.f32 %v399_v23, %v396_v24 }
  0xc0   :  { %v409_v27 = vld [vmem:[#allocation2] sm:$0xff] }
  0xc1   :  { %v423_v28 = vmul.f32 %v416_v25, %v409_v27  ;;  %405 = vst.msk [vmem:[#allocation2 + $0x8] sm:$0x7f] %vm36_vm1, %v401_v26 }
  0xc3   :  { %425 = vst.msk [vmem:[%s519_s3] sm:$0xff] %vm34_vm0, %v423_v28 }
  0xc8   :  { %v410_v30 = vld [vmem:[#allocation2 + $0x8] sm:$0x7f] }
  0xc9   :  { %v424_v31 = vmul.f32 %v421_v29, %v410_v30 }
  0xcb   :  { %426 = vst.msk [vmem:[%s519_s3 + $0x8] sm:$0x7f] %vm36_vm1, %v424_v31 }
  0xcc   :  { %431 = vsyncpa [#allocation4], 1 }

</bundles_post_ra>
